<compile_context>
chip_gen: v6e
topology: v6e:2x2x1
jax: 0.10.0
libtpu: 0.0.40
codegen_flags: <defaults>
</compile_context>

<pallas_src>
import functools

import jax
import jax.numpy as jnp
from jax.experimental import pallas as pl
from jax.experimental.pallas import tpu as pltpu

IN_F = 16
HID_F = 32
OUT_F = 10

# Per-buffer tile cost: x 4096*16*4 = 256 KiB, out 4096*10*4 = 160 KiB.
# Double-buffered this is well under the scoped VMEM limit on v5e/v6e/v7x.
TILE_B_MAX = 4096


def _round_up(n, m):
    return ((n + m - 1) // m) * m


def mlp_kernel(x_ref, w1_ref, b1_ref, w2_ref, b2_ref, o_ref):
    # Two tiny MXU matmuls + VPU bias/ReLU, fused; weights are VMEM-resident.
    x = x_ref[...]                                                   # (TILE_B, 16)
    h = jnp.dot(x, w1_ref[...],
                preferred_element_type=jnp.float32) + b1_ref[...]    # (TILE_B, 32)
    h = jnp.maximum(h, 0.0)                                          # ReLU
    y = jnp.dot(h, w2_ref[...],
                preferred_element_type=jnp.float32) + b2_ref[...]    # (TILE_B, 10)
    o_ref[...] = y.astype(o_ref.dtype)


def prepare_params(w1, b1, w2, b2):
    """One-time conversion from PyTorch (out,in) layout to kernel (in,out) layout.

    Done once at init so the per-call forward has no transpose/reshape HBM passes.
    """
    w1t = jnp.transpose(w1)          # (16, 32)
    b1r = b1.reshape(1, HID_F)       # (1, 32)
    w2t = jnp.transpose(w2)          # (32, 10)
    b2r = b2.reshape(1, OUT_F)       # (1, 10)
    return w1t, b1r, w2t, b2r


@functools.partial(jax.jit, static_argnames=("tile_b_max",))
def toy_model_forward(x, params, *, tile_b_max=TILE_B_MAX):
    """x: (B, 16) f32. params: output of prepare_params(). Returns (B, 10) f32."""
    w1t, b1r, w2t, b2r = params
    B = x.shape[0]

    # Tile selection: multiple of 8 (sublane) and at most tile_b_max rows.
    tile_b = min(tile_b_max, _round_up(B, 8))
    b_pad = _round_up(B, tile_b)
    if b_pad != B:
        x = jnp.pad(x, ((0, b_pad - B), (0, 0)))

    grid = (b_pad // tile_b,)

    out = pl.pallas_call(
        mlp_kernel,
        out_shape=jax.ShapeDtypeStruct((b_pad, OUT_F), jnp.float32),
        grid=grid,
        in_specs=[
            # Batch-tiled activations (pipelined / double-buffered).
            pl.BlockSpec((tile_b, IN_F), lambda i: (i, 0)),
            # Weights & biases: whole-array blocks, VMEM-resident across the grid.
            pl.BlockSpec((IN_F, HID_F), lambda i: (0, 0)),
            pl.BlockSpec((1, HID_F), lambda i: (0, 0)),
            pl.BlockSpec((HID_F, OUT_F), lambda i: (0, 0)),
            pl.BlockSpec((1, OUT_F), lambda i: (0, 0)),
        ],
        out_specs=pl.BlockSpec((tile_b, OUT_F), lambda i: (i, 0)),
        compiler_params=pltpu.CompilerParams(
            dimension_semantics=("parallel",),  # lets v7x use both TensorCores
        ),
    )(x, w1t, b1r, w2t, b2r)

    return out[:B]


def init_params(key):
    """Deterministic init matching nn.Linear's default U(-1/sqrt(fan_in), 1/sqrt(fan_in))."""
    k1, k2, k3, k4 = jax.random.split(key, 4)
    bound1 = 1.0 / jnp.sqrt(float(IN_F))
    bound2 = 1.0 / jnp.sqrt(float(HID_F))
    w1 = jax.random.uniform(k1, (HID_F, IN_F), jnp.float32, -bound1, bound1)
    b1 = jax.random.uniform(k2, (HID_F,), jnp.float32, -bound1, bound1)
    w2 = jax.random.uniform(k3, (OUT_F, HID_F), jnp.float32, -bound2, bound2)
    b2 = jax.random.uniform(k4, (OUT_F,), jnp.float32, -bound2, bound2)
    return w1, b1, w2, b2


def _reference(x, w1, b1, w2, b2):
    return jnp.maximum(x @ w1.T + b1, 0.0) @ w2.T + b2


if __name__ == "__main__":
    key = jax.random.PRNGKey(0)
    k_x1, k_x2, k_p = jax.random.split(key, 3)

    w1, b1, w2, b2 = init_params(k_p)
    params = prepare_params(w1, b1, w2, b2)  # hoisted layout conversion (once)

    # Case 1: tiny batch like the reference module (single-tile path, with padding 2->8).
    B1 = 2
    x1 = jax.random.normal(k_x1, (B1, IN_F), dtype=jnp.float32)
    out1 = jax.block_until_ready(toy_model_forward(x1, params))
    ref1 = _reference(x1, w1, b1, w2, b2)
    assert out1.shape == (B1, OUT_F)
    assert jnp.allclose(out1, ref1, atol=1e-5, rtol=1e-5)

    # Case 2: exercise the multi-tile grid + batch padding path (small forced tile).
    B2 = 200
    x2 = jax.random.normal(k_x2, (B2, IN_F), dtype=jnp.float32)
    out2 = jax.block_until_ready(toy_model_forward(x2, params, tile_b_max=64))
    ref2 = _reference(x2, w1, b1, w2, b2)
    assert out2.shape == (B2, OUT_F)
    assert jnp.allclose(out2, ref2, atol=1e-5, rtol=1e-5)

    print("KERNEL_OK")
</pallas_src>

<mosaic_0001>
module attributes {stable_mosaic.version = 11 : i64} {
  func.func @mlp_kernel(%arg0: i32, %arg1: memref<8x16xf32, #tpu.memory_space<vmem>>, %arg2: memref<16x32xf32, #tpu.memory_space<vmem>>, %arg3: memref<1x32xf32, #tpu.memory_space<vmem>>, %arg4: memref<32x10xf32, #tpu.memory_space<vmem>>, %arg5: memref<1x10xf32, #tpu.memory_space<vmem>>, %arg6: memref<8x10xf32, #tpu.memory_space<vmem>>) attributes {dimension_semantics = [#tpu.dimension_semantics<parallel>], iteration_bounds = array<i64: 1>, scalar_prefetch = 0 : i64, scratch_operands = 0 : i64, tpu.core_type = #tpu.core_type<tc>, window_params = [{transform_indices = @transform_0, window_bounds = array<i64: 8, 16>}, {pipeline_mode = #tpu.pipeline_mode<synchronous>, transform_indices = @transform_1, window_bounds = array<i64: 16, 32>}, {pipeline_mode = #tpu.pipeline_mode<synchronous>, transform_indices = @transform_2, window_bounds = array<i64: 1, 32>}, {pipeline_mode = #tpu.pipeline_mode<synchronous>, transform_indices = @transform_3, window_bounds = array<i64: 32, 10>}, {pipeline_mode = #tpu.pipeline_mode<synchronous>, transform_indices = @transform_4, window_bounds = array<i64: 1, 10>}, {transform_indices = @transform_5, window_bounds = array<i64: 8, 10>}]} {
    %c0 = arith.constant 0 : index
    %c0_0 = arith.constant 0 : index
    %0 = vector.load %arg1[%c0, %c0_0] : memref<8x16xf32, #tpu.memory_space<vmem>>, vector<8x16xf32>
    %c0_1 = arith.constant 0 : index
    %c0_2 = arith.constant 0 : index
    %1 = vector.load %arg2[%c0_1, %c0_2] : memref<16x32xf32, #tpu.memory_space<vmem>>, vector<16x32xf32>
    %cst = arith.constant dense<0.000000e+00> : vector<8x32xf32>
    %2 = tpu.matmul %0, %1, %cst {dimension_numbers = #tpu.dot_dimension_numbers<[1], [0], [0], [1], [0, 0, 1, 1], [], []>} : vector<8x16xf32>, vector<16x32xf32>, vector<8x32xf32> -> vector<8x32xf32>
    %c0_3 = arith.constant 0 : index
    %c0_4 = arith.constant 0 : index
    %3 = vector.load %arg3[%c0_3, %c0_4] : memref<1x32xf32, #tpu.memory_space<vmem>>, vector<1x32xf32>
    %4 = vector.broadcast %3 : vector<1x32xf32> to vector<8x32xf32>
    %5 = arith.addf %2, %4 : vector<8x32xf32>
    %cst_5 = arith.constant 0.000000e+00 : f32
    %6 = vector.broadcast %cst_5 : f32 to vector<8x32xf32>
    %7 = arith.maximumf %5, %6 : vector<8x32xf32>
    %c0_6 = arith.constant 0 : index
    %c0_7 = arith.constant 0 : index
    %8 = vector.load %arg4[%c0_6, %c0_7] : memref<32x10xf32, #tpu.memory_space<vmem>>, vector<32x10xf32>
    %cst_8 = arith.constant dense<0.000000e+00> : vector<8x10xf32>
    %9 = tpu.matmul %7, %8, %cst_8 {dimension_numbers = #tpu.dot_dimension_numbers<[1], [0], [0], [1], [0, 0, 1, 1], [], []>} : vector<8x32xf32>, vector<32x10xf32>, vector<8x10xf32> -> vector<8x10xf32>
    %c0_9 = arith.constant 0 : index
    %c0_10 = arith.constant 0 : index
    %10 = vector.load %arg5[%c0_9, %c0_10] : memref<1x10xf32, #tpu.memory_space<vmem>>, vector<1x10xf32>
    %11 = vector.broadcast %10 : vector<1x10xf32> to vector<8x10xf32>
    %12 = arith.addf %9, %11 : vector<8x10xf32>
    %c0_11 = arith.constant 0 : index
    %c0_12 = arith.constant 0 : index
    %13 = vector.load %arg6[%c0_11, %c0_12] : memref<8x10xf32, #tpu.memory_space<vmem>>, vector<8x10xf32>
    tpu.vector_store %arg6[%c0_11, %c0_12], %12 {strides = array<i32>} : memref<8x10xf32, #tpu.memory_space<vmem>>, vector<8x10xf32>,
    return
  }
  func.func @transform_0(%arg0: i32) -> (i32, i32) {
    %c0_i32 = arith.constant 0 : i32
    %c0_i32_0 = arith.constant 0 : i32
    return %arg0, %c0_i32 : i32, i32
  }
  func.func @transform_1(%arg0: i32) -> (i32, i32) {
    %c0_i32 = arith.constant 0 : i32
    %c0_i32_0 = arith.constant 0 : i32
    %c0_i32_1 = arith.constant 0 : i32
    return %c0_i32, %c0_i32_0 : i32, i32
  }
  func.func @transform_2(%arg0: i32) -> (i32, i32) {
    %c0_i32 = arith.constant 0 : i32
    %c0_i32_0 = arith.constant 0 : i32
    %c0_i32_1 = arith.constant 0 : i32
    return %c0_i32, %c0_i32_0 : i32, i32
  }
  func.func @transform_3(%arg0: i32) -> (i32, i32) {
    %c0_i32 = arith.constant 0 : i32
    %c0_i32_0 = arith.constant 0 : i32
    %c0_i32_1 = arith.constant 0 : i32
    return %c0_i32, %c0_i32_0 : i32, i32
  }
  func.func @transform_4(%arg0: i32) -> (i32, i32) {
    %c0_i32 = arith.constant 0 : i32
    %c0_i32_0 = arith.constant 0 : i32
    %c0_i32_1 = arith.constant 0 : i32
    return %c0_i32, %c0_i32_0 : i32, i32
  }
  func.func @transform_5(%arg0: i32) -> (i32, i32) {
    %c0_i32 = arith.constant 0 : i32
    %c0_i32_0 = arith.constant 0 : i32
    return %arg0, %c0_i32 : i32, i32
  }
}

</mosaic_0001>

<bundles_post_ra>
// kernel: toy_model_forward.1
= control target key start
LH: loop header
LB: loop body
LE: loop exit
PB: predicated region body
PF: predicated region fallthrough
CT: control target
= control target key end

     0   :  { %v228_v0 = vmov 0.0   ;;  %vm229_vm0 = vmmov 0   ;;  %vm30_vm1 = vcmask 130048   ;;  %vm116_vm2 = vcmask 261120   ;;  %s290_s1 = inlined_call_operand.vmem [shape: f32[16,32], index: 1, kind: input, shape index: {}]   ;;  %s291_s0 = inlined_call_operand.vmem [shape: f32[8,16], index: 0, kind: input, shape index: {}]   ;;  %s292_s3 = inlined_call_operand.vmem [shape: f32[32,10], index: 3, kind: input, shape index: {}]   ;;  %s293_s2 = inlined_call_operand.vmem [shape: f32[1,32], index: 2, kind: input, shape index: {}]   ;;  %s294_s4 = inlined_call_operand.vmem [shape: f32[1,10], index: 4, kind: input, shape index: {}]   ;;  %s295_s5 = inlined_call_operand.vmem [shape: f32[8,10], index: 5, kind: output, shape index: {}]  }
   0x1   :  { %208 = vmatprep.subr.mxu0 %v228_v0  ;;  %v22_v1 = vld [vmem:[%s290_s1 + $0x8] sm:$0xff]  ;;  %v21_v2 = vld [vmem:[%s290_s1] sm:$0xff]  ;;  %212 = vmatprep.mubr.msk.f32.mxu0 %vm229_vm0, %v228_v0  ;;  %v108_v4 = vld [vmem:[%s292_s3 + $0x18] sm:$0xff]  ;;  %vm190_vm3 = vcmask 80896  }
   0x2   :  { %209 = vmatpush3.msra.mxu0 %v22_v1  ;;  %v20_v3 = vld [vmem:[%s291_s0] sm:$0xff]  ;;  %215 = vmatprep.subr.mxu1 %v228_v0  ;;  %v107_v5 = vld [vmem:[%s292_s3 + $0x10] sm:$0xff]  ;;  %v106_v6 = vld [vmem:[%s292_s3 + $0x8] sm:$0xff] }
   0x3   :  { %210 = vmatprep.subr.mxu0 %v228_v0  ;;  %216 = vmatpush3.msra.mxu1 %v108_v4  ;;  %v105_v7 = vld [vmem:[%s292_s3] sm:$0xff] }
   0x4   :  { %211 = vmatpush3.msra.mxu0 %v21_v2  ;;  %217 = vmatprep.subr.mxu1 %v228_v0  ;;  %v196_v8 = vld [vmem:[%s293_s2] ss:$0 sm:$0xff] }
   0x5   :  { %213 = vmatmul.mubr.msk.f32.vlgmr.msra.gmra.mxu0 %vm30_vm1, %v20_v3  ;;  %223 = vmatprep.mubr.msk.f32.mxu1 %vm229_vm0, %v228_v0  ;;  %v198_v13 = vld [vmem:[%s294_s4] ss:$0 sm:$0xff] }
   0x6   :  { %218 = vmatpush3.msra.mxu1 %v107_v5 }
   0x7   :  { %219 = vmatprep.subr.mxu1 %v228_v0 }
   0x8   :  { %220 = vmatpush3.msra.mxu1 %v106_v6 }
   0x9   :  { %221 = vmatprep.subr.mxu1 %v228_v0 }
   0xa   :  { %222 = vmatpush3.msra.mxu1 %v105_v7 }
  0xc5   :  { %v100_v9 = vpop.f32.mrf.mxu0 }
  0xc6   :  { %v101_v10 = vadd.f32 %v196_v8, %v100_v9 }
  0xc7   :  { %v214_v11 = vpop.f32.mrf.mxu0 }
  0xc8   :  { %v104_v12 = vmax.f32 %v101_v10, 0.0 }
  0xca   :  { %224 = vmatmul.mubr.msk.f32.vlgmr.msra.gmra.mxu1 %vm116_vm2, %v104_v12 }
 0x18a   :  { %v186_v14 = vpop.f32.mrf.mxu1 }
 0x18b   :  { %v187_v15 = vadd.f32 %v198_v13, %v186_v14 }
 0x18c   :  { %v225_v16 = vpop.f32.mrf.mxu1 }
 0x18d   :  { %191 = vst.msk [vmem:[%s295_s5] sm:$0xff] %vm190_vm3, %v187_v15 }

</bundles_post_ra>
